<compile_context>
chip_gen: v7x
topology: tpu7x:2x2x1
jax: 0.10.0
libtpu: 0.0.40
codegen_flags: <defaults>
</compile_context>

<pallas_src>
import math

import jax
import jax.numpy as jnp
from jax.experimental import pallas as pl
from jax.experimental.pallas import tpu as pltpu


def _round_up(v, m):
    return ((v + m - 1) // m) * m


def _pad2(a, rows, cols):
    return jnp.pad(a, ((0, rows - a.shape[0]), (0, cols - a.shape[1])))


# -----------------------------------------------------------------------------
# HGNN_conv:  out = relu(G @ (x @ W + b)),  tiled over (row tiles, reduction).
# -----------------------------------------------------------------------------
def _conv_kernel(g_ref, x_ref, w_ref, b_ref, o_ref, acc_ref):
    k = pl.program_id(1)

    @pl.when(k == 0)
    def _():
        acc_ref[...] = jnp.zeros_like(acc_ref)

    # (x_k @ W + b) is recomputed per row tile; it is cheap relative to the
    # G-tile matmul and keeps the whole conv a single fused pass over G.
    xw = jnp.dot(x_ref[...], w_ref[...], preferred_element_type=jnp.float32)
    xw = xw + b_ref[...]                                  # f32 elementwise add
    acc_ref[...] += jnp.dot(g_ref[...], xw.astype(jnp.bfloat16),
                            preferred_element_type=jnp.float32)

    @pl.when(k == pl.num_programs(1) - 1)
    def _():
        o_ref[...] = jnp.maximum(acc_ref[...], 0.0).astype(o_ref.dtype)
    # TODO(synk): F.dropout with p>0 / training=True would need the pltpu PRNG
    # (prng_seed + stateful_bernoulli); p=0.0 here so dropout is an identity.


def _hgnn_conv(g_p, x_p, w_p, b_p, *, tile):
    n_pad = g_p.shape[0]
    fin = x_p.shape[1]
    fout = w_p.shape[1]
    grid = (n_pad // tile, n_pad // tile)
    steps = grid[0] * grid[1]
    flops = steps * (2 * tile * fin * fout + 2 * tile * tile * fout)
    bytes_accessed = (n_pad * n_pad * 2                   # G (bf16)
                      + grid[0] * n_pad * fin * 2         # x re-read per row tile
                      + fin * fout * 2 + fout * 4         # W, b
                      + n_pad * fout * 2)                 # output (bf16)
    return pl.pallas_call(
        _conv_kernel,
        out_shape=jax.ShapeDtypeStruct((n_pad, fout), jnp.bfloat16),
        grid_spec=pltpu.PrefetchScalarGridSpec(
            num_scalar_prefetch=0,
            grid=grid,
            in_specs=[
                pl.BlockSpec((tile, tile), lambda i, k: (i, k)),   # G tile
                pl.BlockSpec((tile, fin), lambda i, k: (k, 0)),    # x row block
                pl.BlockSpec((fin, fout), lambda i, k: (0, 0)),    # W (full)
                pl.BlockSpec((1, fout), lambda i, k: (0, 0)),      # b (full row)
            ],
            out_specs=pl.BlockSpec((tile, fout), lambda i, k: (i, 0)),
            scratch_shapes=[pltpu.VMEM((tile, fout), jnp.float32)],
        ),
        compiler_params=pltpu.CompilerParams(
            dimension_semantics=("parallel", "arbitrary"),
            vmem_limit_bytes=32 * 1024 * 1024),
        cost_estimate=pl.CostEstimate(flops=flops, transcendentals=0,
                                      bytes_accessed=bytes_accessed),
    )(g_p, x_p, w_p, b_p)


# -----------------------------------------------------------------------------
# Head:  out = (Q @ h) @ Wl^T + bl, fused, reduction-only grid over N.
# -----------------------------------------------------------------------------
def _head_kernel(q_ref, h_ref, wl_ref, bl_ref, o_ref, acc_ref):
    k = pl.program_id(0)

    @pl.when(k == 0)
    def _():
        acc_ref[...] = jnp.zeros_like(acc_ref)

    acc_ref[...] += jnp.dot(q_ref[...], h_ref[...],
                            preferred_element_type=jnp.float32)

    @pl.when(k == pl.num_programs(0) - 1)
    def _():
        p = acc_ref[...].astype(jnp.bfloat16)
        out = jnp.dot(p, wl_ref[...], preferred_element_type=jnp.float32)
        o_ref[...] = (out + bl_ref[...]).astype(o_ref.dtype)


def _hgnn_head(q_p, h_p, wl_p, bl_p, *, tile):
    m_pad, n_pad = q_p.shape
    h_dim = h_p.shape[1]
    c_dim = wl_p.shape[1]
    grid = (n_pad // tile,)
    flops = 2 * m_pad * n_pad * h_dim + 2 * m_pad * h_dim * c_dim
    bytes_accessed = (m_pad * n_pad * 2 + n_pad * h_dim * 2
                      + h_dim * c_dim * 2 + c_dim * 4 + m_pad * c_dim * 4)
    return pl.pallas_call(
        _head_kernel,
        out_shape=jax.ShapeDtypeStruct((m_pad, c_dim), jnp.float32),
        grid_spec=pltpu.PrefetchScalarGridSpec(
            num_scalar_prefetch=0,
            grid=grid,
            in_specs=[
                pl.BlockSpec((m_pad, tile), lambda k: (0, k)),    # Q column block
                pl.BlockSpec((tile, h_dim), lambda k: (k, 0)),    # h row block
                pl.BlockSpec((h_dim, c_dim), lambda k: (0, 0)),   # Wl^T (full)
                pl.BlockSpec((1, c_dim), lambda k: (0, 0)),       # bl (full row)
            ],
            out_specs=pl.BlockSpec((m_pad, c_dim), lambda k: (0, 0)),
            scratch_shapes=[pltpu.VMEM((m_pad, h_dim), jnp.float32)],
        ),
        compiler_params=pltpu.CompilerParams(
            dimension_semantics=("arbitrary",),
            vmem_limit_bytes=32 * 1024 * 1024),
        cost_estimate=pl.CostEstimate(flops=flops, transcendentals=0,
                                      bytes_accessed=bytes_accessed),
    )(q_p, h_p, wl_p, bl_p)


# -----------------------------------------------------------------------------
# Full forward.
# -----------------------------------------------------------------------------
def hgnn_forward(x, G, Q, w1, b1, w2, b2, wl, bl, *, block=512):
    """x:(N,in_ch)  G:(N,N)  Q:(M,N)  -> (M, n_class).  dropout p=0 -> identity."""
    N, in_ch = x.shape
    n_hid = w1.shape[1]
    n_class = wl.shape[0]
    M = Q.shape[0]

    tile = min(block, _round_up(N, 128))        # lane-/sublane-aligned G tile
    n_pad = _round_up(N, tile)
    ic_pad = _round_up(in_ch, 128)
    h_pad = _round_up(n_hid, 128)
    c_pad = _round_up(n_class, 128)
    m_pad = _round_up(M, 8)

    bf16, f32 = jnp.bfloat16, jnp.float32
    # Zero-pad to lane-dense, tile-aligned shapes; cast MXU operands to bf16.
    x_p = _pad2(x, n_pad, ic_pad).astype(bf16)
    g_p = _pad2(G, n_pad, n_pad).astype(bf16)
    q_p = _pad2(Q, m_pad, n_pad).astype(bf16)
    w1_p = _pad2(w1, ic_pad, h_pad).astype(bf16)
    w2_p = _pad2(w2, h_pad, h_pad).astype(bf16)
    wl_p = _pad2(wl.T, h_pad, c_pad).astype(bf16)        # pre-transposed Linear W
    b1_p = jnp.pad(b1, (0, h_pad - n_hid)).reshape(1, h_pad).astype(f32)
    b2_p = jnp.pad(b2, (0, h_pad - n_hid)).reshape(1, h_pad).astype(f32)
    bl_p = jnp.pad(bl, (0, c_pad - n_class)).reshape(1, c_pad).astype(f32)

    h1 = _hgnn_conv(g_p, x_p, w1_p, b1_p, tile=tile)     # (n_pad, h_pad) bf16
    h2 = _hgnn_conv(g_p, h1, w2_p, b2_p, tile=tile)      # (n_pad, h_pad) bf16
    out = _hgnn_head(q_p, h2, wl_p, bl_p, tile=tile)     # (m_pad, c_pad) f32
    return out[:M, :n_class]


# -----------------------------------------------------------------------------
# References for validation.
# -----------------------------------------------------------------------------
def _ref_forward_f32(x, G, Q, w1, b1, w2, b2, wl, bl):
    h = jnp.maximum(G @ (x @ w1 + b1), 0.0)
    h = jnp.maximum(G @ (h @ w2 + b2), 0.0)
    return (Q @ h) @ wl.T + bl


def _ref_forward_bf16(x, G, Q, w1, b1, w2, b2, wl, bl):
    """Same cast points as the kernels: bf16 MXU operands, f32 accumulation."""
    bf16 = jnp.bfloat16

    def mm(a, b):
        return jnp.dot(a.astype(bf16), b.astype(bf16),
                       preferred_element_type=jnp.float32)

    h = jnp.maximum(mm(G, mm(x, w1) + b1), 0.0).astype(bf16)
    h = jnp.maximum(mm(G, mm(h, w2) + b2), 0.0).astype(bf16)
    p = mm(Q, h).astype(bf16)
    return mm(p, wl.T) + bl


if __name__ == "__main__":
    # Small, deterministic shapes consistent with the module.
    N = 16          # number of nodes
    in_ch = 32      # input feature dim
    n_hid = 32      # hidden dim (must equal in_ch for the final Linear)
    n_class = 8
    M = 8           # rows of Q
    dropout_p = 0.0  # identity

    key = jax.random.PRNGKey(0)
    k = jax.random.split(key, 9)

    x = jax.random.normal(k[0], (N, in_ch), dtype=jnp.float32)
    G = jax.random.normal(k[1], (N, N), dtype=jnp.float32)
    Q = jax.random.normal(k[2], (M, N), dtype=jnp.float32)

    # HGNN_conv parameter init: uniform(-stdv, stdv), stdv = 1/sqrt(out_ft).
    stdv1 = 1.0 / math.sqrt(n_hid)
    w1 = jax.random.uniform(k[3], (in_ch, n_hid), jnp.float32, -stdv1, stdv1)
    b1 = jax.random.uniform(k[4], (n_hid,), jnp.float32, -stdv1, stdv1)
    stdv2 = 1.0 / math.sqrt(n_hid)
    w2 = jax.random.uniform(k[5], (n_hid, n_hid), jnp.float32, -stdv2, stdv2)
    b2 = jax.random.uniform(k[6], (n_hid,), jnp.float32, -stdv2, stdv2)

    # nn.Linear(in_ch, n_class): weight (n_class, in_ch), bias (n_class,).
    bound = 1.0 / math.sqrt(in_ch)
    wl = jax.random.uniform(k[7], (n_class, in_ch), jnp.float32, -bound, bound)
    bl = jax.random.uniform(k[8], (n_class,), jnp.float32, -bound, bound)

    out = jax.block_until_ready(hgnn_forward(x, G, Q, w1, b1, w2, b2, wl, bl))
    assert out.shape == (M, n_class)

    # Tight check against a JAX reference with identical bf16 cast points.
    ref_bf16 = _ref_forward_bf16(x, G, Q, w1, b1, w2, b2, wl, bl)
    assert jnp.allclose(out, ref_bf16, rtol=1e-2, atol=1e-2), \
        "mismatch vs bf16-matmul JAX reference"

    # Loose sanity check against the pure f32 reference (bf16 operand rounding).
    ref_f32 = _ref_forward_f32(x, G, Q, w1, b1, w2, b2, wl, bl)
    assert jnp.allclose(out, ref_f32, rtol=1e-1, atol=5e-1), \
        "mismatch vs f32 JAX reference"

    print("KERNEL_OK")
</pallas_src>

<mosaic_0001>
module attributes {stable_mosaic.version = 11 : i64} {
  func.func @_conv_kernel(%arg0: i32, %arg1: i32, %arg2: memref<128x128xbf16, #tpu.memory_space<vmem>>, %arg3: memref<128x128xbf16, #tpu.memory_space<vmem>>, %arg4: memref<128x128xbf16, #tpu.memory_space<vmem>>, %arg5: memref<1x128xf32, #tpu.memory_space<vmem>>, %arg6: memref<128x128xbf16, #tpu.memory_space<vmem>>, %arg7: memref<128x128xf32, #tpu.memory_space<vmem>>) attributes {dimension_semantics = [#tpu.dimension_semantics<parallel>, #tpu.dimension_semantics<arbitrary>], iteration_bounds = array<i64: 1, 1>, scalar_prefetch = 0 : i64, scratch_operands = 1 : i64, tpu.core_type = #tpu.core_type<tc>, window_params = [{transform_indices = @transform_0, window_bounds = array<i64: 128, 128>}, {transform_indices = @transform_1, window_bounds = array<i64: 128, 128>}, {pipeline_mode = #tpu.pipeline_mode<synchronous>, transform_indices = @transform_2, window_bounds = array<i64: 128, 128>}, {pipeline_mode = #tpu.pipeline_mode<synchronous>, transform_indices = @transform_3, window_bounds = array<i64: 1, 128>}, {transform_indices = @transform_4, window_bounds = array<i64: 128, 128>}]} {
    %c0_i32 = arith.constant 0 : i32
    %0 = arith.cmpi eq, %arg1, %c0_i32 : i32
    %1 = arith.extui %0 : i1 to i32
    %c0_i32_0 = arith.constant 0 : i32
    %2 = arith.cmpi ne, %1, %c0_i32_0 : i32
    scf.if %2 {
      %cst_15 = arith.constant 0.000000e+00 : f32
      %18 = vector.broadcast %cst_15 : f32 to vector<128x128xf32>
      %c0_16 = arith.constant 0 : index
      %c0_17 = arith.constant 0 : index
      %19 = vector.load %arg7[%c0_16, %c0_17] : memref<128x128xf32, #tpu.memory_space<vmem>>, vector<128x128xf32>
      tpu.vector_store %arg7[%c0_16, %c0_17], %18 {strides = array<i32>} : memref<128x128xf32, #tpu.memory_space<vmem>>, vector<128x128xf32>,
    } else {
    }
    %c0 = arith.constant 0 : index
    %c0_1 = arith.constant 0 : index
    %3 = vector.load %arg3[%c0, %c0_1] : memref<128x128xbf16, #tpu.memory_space<vmem>>, vector<128x128xbf16>
    %c0_2 = arith.constant 0 : index
    %c0_3 = arith.constant 0 : index
    %4 = vector.load %arg4[%c0_2, %c0_3] : memref<128x128xbf16, #tpu.memory_space<vmem>>, vector<128x128xbf16>
    %cst = arith.constant dense<0.000000e+00> : vector<128x128xf32>
    %5 = tpu.matmul %3, %4, %cst {dimension_numbers = #tpu.dot_dimension_numbers<[1], [0], [0], [1], [0, 0, 1, 1], [], []>} : vector<128x128xbf16>, vector<128x128xbf16>, vector<128x128xf32> -> vector<128x128xf32>
    %c0_4 = arith.constant 0 : index
    %c0_5 = arith.constant 0 : index
    %6 = vector.load %arg5[%c0_4, %c0_5] : memref<1x128xf32, #tpu.memory_space<vmem>>, vector<1x128xf32>
    %7 = vector.broadcast %6 : vector<1x128xf32> to vector<128x128xf32>
    %8 = arith.addf %5, %7 : vector<128x128xf32>
    %c0_6 = arith.constant 0 : index
    %c0_7 = arith.constant 0 : index
    %9 = vector.load %arg7[%c0_6, %c0_7] : memref<128x128xf32, #tpu.memory_space<vmem>>, vector<128x128xf32>
    %c0_8 = arith.constant 0 : index
    %c0_9 = arith.constant 0 : index
    %10 = vector.load %arg2[%c0_8, %c0_9] : memref<128x128xbf16, #tpu.memory_space<vmem>>, vector<128x128xbf16>
    %11 = arith.truncf %8 : vector<128x128xf32> to vector<128x128xbf16>
    %cst_10 = arith.constant dense<0.000000e+00> : vector<128x128xf32>
    %12 = tpu.matmul %10, %11, %cst_10 {dimension_numbers = #tpu.dot_dimension_numbers<[1], [0], [0], [1], [0, 0, 1, 1], [], []>} : vector<128x128xbf16>, vector<128x128xbf16>, vector<128x128xf32> -> vector<128x128xf32>
    %13 = arith.addf %9, %12 : vector<128x128xf32>
    %c0_11 = arith.constant 0 : index
    %c0_12 = arith.constant 0 : index
    %14 = vector.load %arg7[%c0_11, %c0_12] : memref<128x128xf32, #tpu.memory_space<vmem>>, vector<128x128xf32>
    tpu.vector_store %arg7[%c0_11, %c0_12], %13 {strides = array<i32>} : memref<128x128xf32, #tpu.memory_space<vmem>>, vector<128x128xf32>,
    %c0_i32_13 = arith.constant 0 : i32
    %15 = arith.cmpi eq, %arg1, %c0_i32_13 : i32
    %16 = arith.extui %15 : i1 to i32
    %c0_i32_14 = arith.constant 0 : i32
    %17 = arith.cmpi ne, %16, %c0_i32_14 : i32
    scf.if %17 {
      %c0_15 = arith.constant 0 : index
      %c0_16 = arith.constant 0 : index
      %18 = vector.load %arg7[%c0_15, %c0_16] : memref<128x128xf32, #tpu.memory_space<vmem>>, vector<128x128xf32>
      %cst_17 = arith.constant 0.000000e+00 : f32
      %19 = vector.broadcast %cst_17 : f32 to vector<128x128xf32>
      %20 = arith.maximumf %18, %19 : vector<128x128xf32>
      %21 = arith.truncf %20 : vector<128x128xf32> to vector<128x128xbf16>
      %c0_18 = arith.constant 0 : index
      %c0_19 = arith.constant 0 : index
      %22 = vector.load %arg6[%c0_18, %c0_19] : memref<128x128xbf16, #tpu.memory_space<vmem>>, vector<128x128xbf16>
      tpu.vector_store %arg6[%c0_18, %c0_19], %21 {strides = array<i32>} : memref<128x128xbf16, #tpu.memory_space<vmem>>, vector<128x128xbf16>,
    } else {
    }
    return
  }
  func.func @transform_0(%arg0: i32, %arg1: i32) -> (i32, i32) {
    %c0_i32 = arith.constant 0 : i32
    return %arg0, %arg1 : i32, i32
  }
  func.func @transform_1(%arg0: i32, %arg1: i32) -> (i32, i32) {
    %c0_i32 = arith.constant 0 : i32
    %c0_i32_0 = arith.constant 0 : i32
    return %arg1, %c0_i32 : i32, i32
  }
  func.func @transform_2(%arg0: i32, %arg1: i32) -> (i32, i32) {
    %c0_i32 = arith.constant 0 : i32
    %c0_i32_0 = arith.constant 0 : i32
    %c0_i32_1 = arith.constant 0 : i32
    return %c0_i32, %c0_i32_0 : i32, i32
  }
  func.func @transform_3(%arg0: i32, %arg1: i32) -> (i32, i32) {
    %c0_i32 = arith.constant 0 : i32
    %c0_i32_0 = arith.constant 0 : i32
    %c0_i32_1 = arith.constant 0 : i32
    return %c0_i32, %c0_i32_0 : i32, i32
  }
  func.func @transform_4(%arg0: i32, %arg1: i32) -> (i32, i32) {
    %c0_i32 = arith.constant 0 : i32
    %c0_i32_0 = arith.constant 0 : i32
    return %arg0, %c0_i32 : i32, i32
  }
}

</mosaic_0001>

<bundles_post_ra>
// kernel: tpu_custom_call.1
= control target key start
LH: loop header
LB: loop body
LE: loop exit
PB: predicated region body
PF: predicated region fallthrough
CT: control target
= control target key end

     0   :  { %9 = vsyncpa [#allocation4], 0  ;;  %s1087_s0 = inlined_call_operand.hbm [shape: bf16[128,128], index: 0, kind: input, shape index: {}]   ;;  %s1088_s1 = inlined_call_operand.hbm [shape: bf16[128,128], index: 1, kind: input, shape index: {}]   ;;  %s1089_s2 = inlined_call_operand.hbm [shape: bf16[128,128], index: 2, kind: input, shape index: {}]   ;;  %s1090_s3 = inlined_call_operand.vmem [shape: f32[1,128], index: 3, kind: input, shape index: {}]   ;;  %s1091_s4 = inlined_call_operand.hbm [shape: bf16[128,128], index: 4, kind: output, shape index: {}]  }
   0x1   :  { %10 = vsyncpa [#allocation7], 0 }
   0x2   :  { %11 = vsyncpa [#allocation5], 0  ;;  %s986_s15 = smov [#allocation6]   ;;  %s987_s17 = smov [#allocation3]  }
   0x3   :  { %s29_s16 = sshll.u32 %s986_s15, 4  ;;  %s17_s18 = sshll.u32 %s987_s17, 4  ;;  %s30_s16 = int_to_ptr.vmem [resolvable:$true] %s29_s16  ;;  %s1017_s18 = int_to_ptr.vmem [resolvable:$true] %s17_s18 }
   0x4   :  { %s892_s21 = scalar_lea.hbm %s1088_s1, 1024 }
   0x5   :  { %p893_p0 = scmp.ne.s32.totalorder %s1088_s1, %s892_s21  ;;  %p896_p1 = scmp.lt.u32.totalorder %s892_s21, %s1088_s1 }
   0x7   :  { %p898_p2 = pnand %p896_p1, %p893_p0 }
   0x9   :  { %901 = shalt.err (!%p898_p2)
}
   0xa   :  { %s902_s26 = scalar_lea.vmem %s30_s16, 1024  ;;  %p907_p4 = scmp.lt.s32.totalorder %s30_s16, %s30_s16 }
   0xb   :  { %p903_p3 = scmp.ne.s32.totalorder %s30_s16, %s902_s26  ;;  %p908_p5 = scmp.lt.s32.totalorder %s902_s26, %s902_s26 }
   0xd   :  { %p909_p6 = por %p908_p5, %p907_p4 }
   0xf   :  { %p910_p7 = pnand %p909_p6, %p903_p3 }
  0x11   :  { %913 = shalt.err (!%p910_p7)
}
  0x12   :  { %s988_s27 = smov 64   ;;  %s989_s28 = smov 4  }
  0x13   :  { %35 = dma.hbm_to_vmem [thread:$0]  %s1088_s1, 1024, %s30_s16, [#allocation7], %s988_s27, %s988_s27, %s989_s28  }
  0x14   :  { %s914_s7 = scalar_lea.hbm %s1087_s0, 1024 }
  0x15   :  { %p915_p8 = scmp.ne.s32.totalorder %s1087_s0, %s914_s7  ;;  %p918_p9 = scmp.lt.u32.totalorder %s914_s7, %s1087_s0 }
  0x17   :  { %p920_p10 = pnand %p918_p9, %p915_p8 }
  0x19   :  { %923 = shalt.err (!%p920_p10)
}
  0x1a   :  { %s924_s12 = scalar_lea.vmem %s1017_s18, 1024  ;;  %p929_p12 = scmp.lt.s32.totalorder %s1017_s18, %s1017_s18 }
  0x1b   :  { %p925_p11 = scmp.ne.s32.totalorder %s1017_s18, %s924_s12  ;;  %p930_p13 = scmp.lt.s32.totalorder %s924_s12, %s924_s12 }
  0x1d   :  { %p931_p0 = por %p930_p13, %p929_p12 }
  0x1f   :  { %p932_p1 = pnand %p931_p0, %p925_p11 }
  0x21   :  { %935 = shalt.err (!%p932_p1)
}
  0x22   :  { %23 = dma.hbm_to_vmem [thread:$0]  %s1087_s0, 1024, %s1017_s18, [#allocation4], %s988_s27, %s988_s27, %s989_s28  }
  0x23   :  { %s990_s14 = smov [#allocation8]   ;;  %s936_s19 = scalar_lea.hbm %s1089_s2, 1024 }
  0x24   :  { %s41_s15 = sshll.u32 %s990_s14, 4  ;;  %p937_p2 = scmp.ne.s32.totalorder %s1089_s2, %s936_s19  ;;  %s42_s15 = int_to_ptr.vmem [resolvable:$true] %s41_s15 }
  0x25   :  { %p940_p3 = scmp.lt.u32.totalorder %s936_s19, %s1089_s2 }
  0x27   :  { %p942_p4 = pnand %p940_p3, %p937_p2 }
  0x29   :  { %945 = shalt.err (!%p942_p4)
}
  0x2a   :  { %s946_s24 = scalar_lea.vmem %s42_s15, 1024  ;;  %p951_p6 = scmp.lt.s32.totalorder %s42_s15, %s42_s15 }
  0x2b   :  { %p947_p5 = scmp.ne.s32.totalorder %s42_s15, %s946_s24  ;;  %p952_p7 = scmp.lt.s32.totalorder %s946_s24, %s946_s24 }
  0x2d   :  { %p953_p8 = por %p952_p7, %p951_p6 }
  0x2f   :  { %p954_p9 = pnand %p953_p8, %p947_p5 }
  0x31   :  { %957 = shalt.err (!%p954_p9)
}
  0x32   :  { %47 = dma.hbm_to_vmem [thread:$0]  %s1089_s2, 1024, %s42_s15, [#allocation7], %s988_s27, %s988_s27, %s989_s28  }
  0x33   :  { %980 = dma.done.wait [#allocation4], 1024  }
  0x34   :  { %981 = vsyncadd [#allocation4], 4294966272 }
  0x35   :  { %982 = dma.done.wait [#allocation7], 2048  }
  0x36   :  { %983 = vsyncadd [#allocation7], 4294965248  ;;  %v868_v0 = vld [vmem:[#allocation8] sm:$0xff]   ;;  %v869_v1 = vld [vmem:[#allocation8 + $0x8] sm:$0xff]  }
  0x37   :  { %798 = vmatprep.subr.bf16.mxu0 %v868_v0  ;;  %v870_v2 = vld [vmem:[#allocation8 + $0x10] sm:$0xff]   ;;  %v871_v3 = vld [vmem:[#allocation8 + $0x18] sm:$0xff]   ;;  %v876_v4 = vld [vmem:[#allocation6] sm:$0xff]  }
  0x38   :  { %799 = vmatpush3.bf16.msra.mxu0 %v868_v0  ;;  %814 = vmatprep.mubr.bf16.mxu0 %v876_v4  ;;  %v872_v5 = vld [vmem:[#allocation8 + $0x20] sm:$0xff]   ;;  %v873_v6 = vld [vmem:[#allocation8 + $0x28] sm:$0xff]   ;;  %v874_v7 = vld [vmem:[#allocation8 + $0x30] sm:$0xff]  }
  0x39   :  { %800 = vmatprep.subr.bf16.mxu0 %v869_v1  ;;  %v875_v8 = vld [vmem:[#allocation8 + $0x38] sm:$0xff]   ;;  %v877_v9 = vld [vmem:[#allocation6 + $0x8] sm:$0xff]   ;;  %v878_v10 = vld [vmem:[#allocation6 + $0x10] sm:$0xff]  }
  0x3a   :  { %v879_v11 = vld [vmem:[#allocation6 + $0x18] sm:$0xff]   ;;  %v880_v12 = vld [vmem:[#allocation6 + $0x20] sm:$0xff]   ;;  %v881_v13 = vld [vmem:[#allocation6 + $0x28] sm:$0xff]  }
  0x3b   :  { %v882_v14 = vld [vmem:[#allocation6 + $0x30] sm:$0xff]   ;;  %v883_v15 = vld [vmem:[#allocation6 + $0x38] sm:$0xff]   ;;  %v884_v16 = vld [vmem:[#allocation3] sm:$0xff]  }
  0x3c   :  { %801 = vmatpush3.bf16.msra.mxu0 %v869_v1  ;;  %846 = vmatprep.mubr.bf16.mxu1 %v884_v16  ;;  %v662_v18 = vld [vmem:[%s1090_s3] ss:$0 sm:$0xff]  ;;  %v885_v58 = vld [vmem:[#allocation3 + $0x8] sm:$0xff]   ;;  %v886_v59 = vld [vmem:[#allocation3 + $0x10] sm:$0xff]   ;;  %s991_s3 = smov [#allocation9]  }
  0x3d   :  { %802 = vmatprep.subr.bf16.mxu0 %v870_v2  ;;  %v887_v60 = vld [vmem:[#allocation3 + $0x18] sm:$0xff]   ;;  %v888_v61 = vld [vmem:[#allocation3 + $0x20] sm:$0xff]   ;;  %v889_v62 = vld [vmem:[#allocation3 + $0x28] sm:$0xff]   ;;  %s649_s26 = sshll.u32 %s991_s3, 4  ;;  %s650_s26 = int_to_ptr.vmem [resolvable:$true] %s649_s26 }
  0x3e   :  { %v890_v63 = vld [vmem:[#allocation3 + $0x30] sm:$0xff]   ;;  %v891_v0 = vld [vmem:[#allocation3 + $0x38] sm:$0xff]   ;;  %s958_s29 = scalar_lea.vmem %s650_s26, 1024  ;;  %p963_p11 = scmp.lt.s32.totalorder %s650_s26, %s650_s26 }
  0x3f   :  { %p959_p10 = scmp.ne.s32.totalorder %s650_s26, %s958_s29  ;;  %p964_p12 = scmp.lt.s32.totalorder %s958_s29, %s958_s29 }
  0x40   :  { %803 = vmatpush3.bf16.msra.mxu0 %v870_v2 }
  0x41   :  { %804 = vmatprep.subr.bf16.mxu0 %v871_v3  ;;  %p965_p13 = por %p964_p12, %p963_p11 }
  0x43   :  { %p966_p0 = pnand %p965_p13, %p959_p10 }
  0x44   :  { %805 = vmatpush3.bf16.msra.mxu0 %v871_v3 }
  0x45   :  { %806 = vmatprep.subr.bf16.mxu0 %v872_v5 }
  0x48   :  { %807 = vmatpush3.bf16.msra.mxu0 %v872_v5 }
  0x49   :  { %808 = vmatprep.subr.bf16.mxu0 %v873_v6 }
  0x4c   :  { %809 = vmatpush3.bf16.msra.mxu0 %v873_v6 }
  0x4d   :  { %810 = vmatprep.subr.bf16.mxu0 %v874_v7 }
  0x50   :  { %811 = vmatpush3.bf16.msra.mxu0 %v874_v7 }
  0x51   :  { %812 = vmatprep.subr.bf16.mxu0 %v875_v8 }
  0x54   :  { %813 = vmatpush3.bf16.msra.mxu0 %v875_v8 }
  0x57   :  { %815 = vmatmul.mubr.bf16.vlgmr.msra.gmra.mrb[0].mxu0 %v877_v9 }
  0x58   :  { %818 = vmatprep.mubr.bf16.mxu0 %v878_v10 }
  0x5f   :  { %819 = vmatmul.mubr.bf16.gmra.mrb[4].mxu0 %v879_v11 }
  0x60   :  { %822 = vmatprep.mubr.bf16.mxu0 %v880_v12 }
  0x67   :  { %823 = vmatmul.mubr.bf16.gmra.mrb[8].mxu0 %v881_v13 }
  0x68   :  { %826 = vmatprep.mubr.bf16.mxu0 %v882_v14 }
  0x6f   :  { %827 = vmatmul.mubr.bf16.gmra.mrb[12].mxu0 %v883_v15 }
 0x12a   :  { %v816_v17 = vpop.f32.mrb[0].mxu0 }
 0x12b   :  { %v249_v19 = vpop.f32.mrb[1].mxu0  ;;  %v258_v21 = vadd.f32 %v816_v17, %v662_v18 }
 0x12c   :  { %v817_v20 = vpop.f32.mrb[2].mxu0  ;;  %v250_v24 = vadd.f32 %v662_v18, %v249_v19 }
 0x12d   :  { %v261_v22 = vadd.f32 %v817_v20, %v662_v18  ;;  %v252_v23 = vpop.f32.mrb[3].mxu0 }
 0x12e   :  { %v253_v25 = vadd.f32 %v662_v18, %v252_v23 }
 0x12f   :  { %v345_v26 = vpack.c.bf16 %v261_v22, %v258_v21 }
 0x130   :  { %v344_v27 = vpack.c.bf16 %v253_v25, %v250_v24 }
 0x132   :  { %v820_v28 = vpop.f32.mrb[4].mxu0  ;;  %830 = vmatprep.subr.bf16.mxu1 %v344_v27 }
 0x133   :  { %v265_v29 = vpop.f32.mrb[5].mxu0  ;;  %831 = vmatpush3.bf16.msra.mxu1 %v344_v27  ;;  %v274_v31 = vadd.f32 %v820_v28, %v662_v18 }
 0x134   :  { %v821_v30 = vpop.f32.mrb[6].mxu0  ;;  %832 = vmatprep.subr.bf16.mxu1 %v345_v26  ;;  %v266_v34 = vadd.f32 %v662_v18, %v265_v29 }
 0x135   :  { %v277_v32 = vadd.f32 %v821_v30, %v662_v18  ;;  %v268_v33 = vpop.f32.mrb[7].mxu0 }
 0x136   :  { %v269_v35 = vadd.f32 %v662_v18, %v268_v33 }
 0x137   :  { %v347_v36 = vpack.c.bf16 %v277_v32, %v274_v31  ;;  %833 = vmatpush3.bf16.msra.mxu1 %v345_v26 }
 0x138   :  { %v346_v37 = vpack.c.bf16 %v269_v35, %v266_v34 }
 0x13a   :  { %v824_v38 = vpop.f32.mrb[8].mxu0  ;;  %834 = vmatprep.subr.bf16.mxu1 %v346_v37 }
 0x13b   :  { %v281_v39 = vpop.f32.mrb[9].mxu0  ;;  %835 = vmatpush3.bf16.msra.mxu1 %v346_v37  ;;  %v290_v41 = vadd.f32 %v824_v38, %v662_v18 }
 0x13c   :  { %v825_v40 = vpop.f32.mrb[10].mxu0  ;;  %836 = vmatprep.subr.bf16.mxu1 %v347_v36  ;;  %v282_v44 = vadd.f32 %v662_v18, %v281_v39 }
 0x13d   :  { %v293_v42 = vadd.f32 %v825_v40, %v662_v18  ;;  %v284_v43 = vpop.f32.mrb[11].mxu0 }
 0x13e   :  { %v285_v45 = vadd.f32 %v662_v18, %v284_v43 }
 0x13f   :  { %v349_v46 = vpack.c.bf16 %v293_v42, %v290_v41  ;;  %837 = vmatpush3.bf16.msra.mxu1 %v347_v36 }
 0x140   :  { %v348_v47 = vpack.c.bf16 %v285_v45, %v282_v44 }
 0x142   :  { %v828_v48 = vpop.f32.mrb[12].mxu0  ;;  %838 = vmatprep.subr.bf16.mxu1 %v348_v47 }
 0x143   :  { %v297_v49 = vpop.f32.mrb[13].mxu0  ;;  %839 = vmatpush3.bf16.msra.mxu1 %v348_v47  ;;  %v306_v51 = vadd.f32 %v828_v48, %v662_v18 }
 0x144   :  { %v829_v50 = vpop.f32.mrb[14].mxu0  ;;  %840 = vmatprep.subr.bf16.mxu1 %v349_v46  ;;  %v298_v54 = vadd.f32 %v662_v18, %v297_v49 }
 0x145   :  { %v309_v52 = vadd.f32 %v829_v50, %v662_v18  ;;  %v300_v53 = vpop.f32.mrb[15].mxu0 }
 0x146   :  { %v301_v55 = vadd.f32 %v662_v18, %v300_v53 }
 0x147   :  { %v351_v56 = vpack.c.bf16 %v309_v52, %v306_v51  ;;  %841 = vmatpush3.bf16.msra.mxu1 %v349_v46 }
 0x148   :  { %v350_v57 = vpack.c.bf16 %v301_v55, %v298_v54 }
 0x14a   :  { %842 = vmatprep.subr.bf16.mxu1 %v350_v57 }
 0x14b   :  { %843 = vmatpush3.bf16.msra.mxu1 %v350_v57 }
 0x14c   :  { %844 = vmatprep.subr.bf16.mxu1 %v351_v56 }
 0x14f   :  { %845 = vmatpush3.bf16.msra.mxu1 %v351_v56 }
 0x152   :  { %847 = vmatmul.mubr.bf16.vlgmr.msra.gmra.mrb[0].mxu1 %v885_v58 }
 0x153   :  { %850 = vmatprep.mubr.bf16.mxu1 %v886_v59 }
 0x15a   :  { %851 = vmatmul.mubr.bf16.gmra.mrb[4].mxu1 %v887_v60 }
 0x15b   :  { %854 = vmatprep.mubr.bf16.mxu1 %v888_v61 }
 0x162   :  { %855 = vmatmul.mubr.bf16.gmra.mrb[8].mxu1 %v889_v62 }
 0x163   :  { %858 = vmatprep.mubr.bf16.mxu1 %v890_v63 }
 0x16a   :  { %859 = vmatmul.mubr.bf16.gmra.mrb[12].mxu1 %v891_v0 }
 0x225   :  { %v848_v1 = vpop.f32.mrb[0].mxu1 }
 0x226   :  { %v434_v2 = vpop.f32.mrb[1].mxu1  ;;  %v550_v4 = vmax.f32 %v848_v1, 0.0 }
 0x227   :  { %v849_v3 = vpop.f32.mrb[2].mxu1  ;;  %v548_v7 = vmax.f32 %v434_v2, 0.0 }
 0x228   :  { %v551_v5 = vmax.f32 %v849_v3, 0.0  ;;  %v437_v6 = vpop.f32.mrb[3].mxu1 }
 0x229   :  { %v549_v8 = vmax.f32 %v437_v6, 0.0 }
 0x22a   :  { %v727_v9 = vpack.c.bf16 %v551_v5, %v550_v4 }
 0x22b   :  { %v722_v10 = vpack.c.bf16 %v549_v8, %v548_v7 }
 0x22c   :  { %759 = vst [vmem:[#allocation9 + $0x8] sm:$0xff] %v727_v9  }
 0x22d   :  { %723 = vst [vmem:[#allocation9] sm:$0xff] %v722_v10   ;;  %v852_v11 = vpop.f32.mrb[4].mxu1 }
 0x22e   :  { %v450_v12 = vpop.f32.mrb[5].mxu1  ;;  %v554_v14 = vmax.f32 %v852_v11, 0.0 }
 0x22f   :  { %v853_v13 = vpop.f32.mrb[6].mxu1  ;;  %v552_v17 = vmax.f32 %v450_v12, 0.0 }
 0x230   :  { %v555_v15 = vmax.f32 %v853_v13, 0.0  ;;  %v453_v16 = vpop.f32.mrb[7].mxu1 }
 0x231   :  { %v553_v18 = vmax.f32 %v453_v16, 0.0 }
 0x232   :  { %v737_v19 = vpack.c.bf16 %v555_v15, %v554_v14 }
 0x233   :  { %v732_v20 = vpack.c.bf16 %v553_v18, %v552_v17 }
 0x234   :  { %761 = vst [vmem:[#allocation9 + $0x18] sm:$0xff] %v737_v19  }
 0x235   :  { %760 = vst [vmem:[#allocation9 + $0x10] sm:$0xff] %v732_v20   ;;  %v856_v21 = vpop.f32.mrb[8].mxu1 }
 0x236   :  { %v466_v22 = vpop.f32.mrb[9].mxu1  ;;  %v558_v24 = vmax.f32 %v856_v21, 0.0 }
 0x237   :  { %v857_v23 = vpop.f32.mrb[10].mxu1  ;;  %v556_v27 = vmax.f32 %v466_v22, 0.0 }
 0x238   :  { %v559_v25 = vmax.f32 %v857_v23, 0.0  ;;  %v469_v26 = vpop.f32.mrb[11].mxu1 }
 0x239   :  { %v557_v28 = vmax.f32 %v469_v26, 0.0 }
 0x23a   :  { %v747_v29 = vpack.c.bf16 %v559_v25, %v558_v24 }
 0x23b   :  { %v742_v30 = vpack.c.bf16 %v557_v28, %v556_v27 }
 0x23c   :  { %763 = vst [vmem:[#allocation9 + $0x28] sm:$0xff] %v747_v29  }
 0x23d   :  { %762 = vst [vmem:[#allocation9 + $0x20] sm:$0xff] %v742_v30   ;;  %v860_v31 = vpop.f32.mrb[12].mxu1 }
 0x23e   :  { %v482_v32 = vpop.f32.mrb[13].mxu1  ;;  %v562_v34 = vmax.f32 %v860_v31, 0.0 }
 0x23f   :  { %v861_v33 = vpop.f32.mrb[14].mxu1  ;;  %v560_v37 = vmax.f32 %v482_v32, 0.0 }
 0x240   :  { %v563_v35 = vmax.f32 %v861_v33, 0.0  ;;  %v485_v36 = vpop.f32.mrb[15].mxu1 }
 0x241   :  { %v561_v38 = vmax.f32 %v485_v36, 0.0 }
 0x242   :  { %v757_v39 = vpack.c.bf16 %v563_v35, %v562_v34 }
 0x243   :  { %v752_v40 = vpack.c.bf16 %v561_v38, %v560_v37 }
 0x244   :  { %765 = vst [vmem:[#allocation9 + $0x38] sm:$0xff] %v757_v39  }
 0x245   :  { %764 = vst [vmem:[#allocation9 + $0x30] sm:$0xff] %v752_v40  }
 0x246   :  { %969 = shalt.err (!%p966_p0)
}
 0x247   :  { %s970_s6 = scalar_lea.hbm %s1091_s4, 1024 }
 0x248   :  { %p971_p1 = scmp.ne.s32.totalorder %s1091_s4, %s970_s6  ;;  %p974_p2 = scmp.lt.u32.totalorder %s970_s6, %s1091_s4 }
 0x24a   :  { %p976_p3 = pnand %p974_p2, %p971_p1 }
 0x24c   :  { %979 = shalt.err (!%p976_p3)
}
 0x24d   :  { %655 = dma.vmem_to_hbm [thread:$0]  %s650_s26, 1024, %s1091_s4, [#allocation5], %s988_s27, %s988_s27, %s989_s28  }
 0x24e   :  { %984 = dma.done.wait [#allocation5], 1024  }
 0x24f   :  { %985 = vsyncadd [#allocation5], 4294966272 }
 0x250   :  { %659 = vsyncpa [#allocation4], 1 }
 0x251   :  { %660 = vsyncpa [#allocation7], 1 }
 0x252   :  { %661 = vsyncpa [#allocation5], 1 }

</bundles_post_ra>
